<compile_context>
chip_gen: v5e
topology: v5e:2x2
jax: 0.10.0
libtpu: 0.0.40
codegen_flags: <defaults>
</compile_context>

<pallas_src>
import functools

import jax
import jax.numpy as jnp
from jax.experimental import pallas as pl
from jax.experimental.pallas import tpu as pltpu

_LANE = 128
_SUBLANE = 8
_EPS = 1e-5


def _round_up(n, m):
    return ((n + m - 1) // m) * m


def classblock_kernel(x_ref, gamma_ref, beta_ref, w_ref, feat_ref, out_ref,
                      *, true_batch):
    # Whole (padded) problem fits in one VMEM block -> single program.
    x = x_ref[...]                                          # (Bp, Dp) f32
    inv_b = jnp.float32(1.0 / true_batch)                   # static constant

    # --- BatchNorm1d stats: one sweep of x (sum + sum of squares). Padded
    # rows are zero so they contribute nothing; divide by the true batch. ---
    s = jnp.sum(x, axis=0, keepdims=True)                   # (1, Dp)
    sq = jnp.sum(x * x, axis=0, keepdims=True)              # (1, Dp)
    mean = s * inv_b
    var = sq * inv_b - mean * mean                          # biased variance
    inv_std = jax.lax.rsqrt(var + _EPS)

    # --- fold affine into per-feature scale/shift (cheap (1, Dp) math) ---
    scale = inv_std * gamma_ref[...]                        # (1, Dp)
    shift = beta_ref[...] - mean * scale                    # (1, Dp)

    # --- only 2 full-width VPU ops on the (Bp, Dp) tensor ---
    feat = x * scale + shift
    feat_ref[...] = feat.astype(feat_ref.dtype)

    # --- Linear (no bias): out = feat @ W^T, W kept as (Cp, Dp).
    # bf16 MXU operands, f32 accumulation.
    out = jax.lax.dot_general(
        feat.astype(jnp.bfloat16), w_ref[...],
        dimension_numbers=(((1,), (1,)), ((), ())),
        preferred_element_type=jnp.float32)
    out_ref[...] = out.astype(out_ref.dtype)


def class_block_forward(x, gamma, beta, w):
    """x: (B, D); gamma/beta: (D,); w: (C, D). Returns (pfeat, feat, out)."""
    B, D = x.shape
    C = w.shape[0]
    Bp = _round_up(B, _SUBLANE)
    Dp = _round_up(D, _LANE)
    Cp = _round_up(C, _LANE)

    # Pad to sublane/lane multiples so every vector load/store is unmasked and
    # the outputs are lane-dense. Zero padding keeps padded features/classes 0.
    x_p = jnp.pad(x.astype(jnp.float32), ((0, Bp - B), (0, Dp - D)))
    gamma_p = jnp.pad(gamma.astype(jnp.float32), (0, Dp - D)).reshape(1, Dp)
    beta_p = jnp.pad(beta.astype(jnp.float32), (0, Dp - D)).reshape(1, Dp)
    # Keep PyTorch (C, D) layout -- no wrapper-side transpose / extra HBM copy.
    w_p = jnp.pad(w, ((0, Cp - C), (0, Dp - D))).astype(jnp.bfloat16)

    feat_p, out_p = pl.pallas_call(
        functools.partial(classblock_kernel, true_batch=B),
        out_shape=(
            jax.ShapeDtypeStruct((Bp, Dp), jnp.float32),
            jax.ShapeDtypeStruct((Bp, Cp), jnp.float32),
        ),
        in_specs=[
            pl.BlockSpec(memory_space=pltpu.MemorySpace.VMEM),
            pl.BlockSpec(memory_space=pltpu.MemorySpace.VMEM),
            pl.BlockSpec(memory_space=pltpu.MemorySpace.VMEM),
            pl.BlockSpec(memory_space=pltpu.MemorySpace.VMEM),
        ],
        out_specs=(
            pl.BlockSpec(memory_space=pltpu.MemorySpace.VMEM),
            pl.BlockSpec(memory_space=pltpu.MemorySpace.VMEM),
        ),
        compiler_params=pltpu.CompilerParams(
            vmem_limit_bytes=32 * 1024 * 1024),
    )(x_p, gamma_p, beta_p, w_p)

    feat = feat_p[:B, :D].astype(x.dtype)
    out = out_p[:B, :C].astype(x.dtype)
    # pfeat is the untouched input (identity passthrough in the PyTorch module).
    return x, feat, out


if __name__ == "__main__":
    B, INPUT_DIM, CLASS_NUM = 8, 32, 16

    key = jax.random.PRNGKey(0)
    kx, kg, kw = jax.random.split(key, 3)

    x = jax.random.normal(kx, (B, INPUT_DIM), dtype=jnp.float32)

    # Deterministic parameter init mirroring the PyTorch init functions:
    #   BatchNorm1d (weights_init_kaiming): weight ~ N(1, 0.01), bias = 0
    #   Linear      (weights_init_classifier): weight ~ N(0, 0.001), no bias
    gamma = 1.0 + 0.01 * jax.random.normal(kg, (INPUT_DIM,), dtype=jnp.float32)
    beta = jnp.zeros((INPUT_DIM,), dtype=jnp.float32)
    w = 0.001 * jax.random.normal(kw, (CLASS_NUM, INPUT_DIM), dtype=jnp.float32)

    pfeat, feat, out = class_block_forward(x, gamma, beta, w)
    jax.block_until_ready((pfeat, feat, out))

    # Reference check in plain JAX (training-mode BatchNorm1d + Linear).
    mean = jnp.mean(x, axis=0, keepdims=True)
    var = jnp.mean((x - mean) ** 2, axis=0, keepdims=True)
    feat_ref = (x - mean) / jnp.sqrt(var + 1e-5) * gamma + beta
    out_ref = feat_ref @ w.T
    assert jnp.allclose(pfeat, x)
    assert jnp.allclose(feat, feat_ref, atol=1e-5, rtol=1e-5)
    # Classifier output compared with relaxed tolerance (bf16 MXU operands).
    assert jnp.allclose(out, out_ref, atol=1e-3, rtol=1e-2)

    print("KERNEL_OK")
</pallas_src>

<mosaic_0001>
module attributes {stable_mosaic.version = 11 : i64} {
  func.func @classblock_kernel(%arg0: memref<8x128xf32, #tpu.memory_space<vmem>>, %arg1: memref<1x128xf32, #tpu.memory_space<vmem>>, %arg2: memref<1x128xf32, #tpu.memory_space<vmem>>, %arg3: memref<128x128xbf16, #tpu.memory_space<vmem>>, %arg4: memref<8x128xf32, #tpu.memory_space<vmem>>, %arg5: memref<8x128xf32, #tpu.memory_space<vmem>>) attributes {dimension_semantics = [], scalar_prefetch = 0 : i64, scratch_operands = 0 : i64, tpu.core_type = #tpu.core_type<tc>} {
    %c0 = arith.constant 0 : index
    %c0_0 = arith.constant 0 : index
    %0 = vector.load %arg0[%c0, %c0_0] : memref<8x128xf32, #tpu.memory_space<vmem>>, vector<8x128xf32>
    %cst = arith.constant dense<0.000000e+00> : vector<128xf32>
    %1 = vector.multi_reduction <add>, %0, %cst [0] : vector<8x128xf32> to vector<128xf32>
    %2 = vector.shape_cast %1 : vector<128xf32> to vector<1x128xf32>
    %3 = arith.mulf %0, %0 : vector<8x128xf32>
    %cst_1 = arith.constant dense<0.000000e+00> : vector<128xf32>
    %4 = vector.multi_reduction <add>, %3, %cst_1 [0] : vector<8x128xf32> to vector<128xf32>
    %5 = vector.shape_cast %4 : vector<128xf32> to vector<1x128xf32>
    %cst_2 = arith.constant 1.250000e-01 : f32
    %6 = vector.broadcast %cst_2 : f32 to vector<1x128xf32>
    %7 = arith.mulf %2, %6 : vector<1x128xf32>
    %cst_3 = arith.constant 1.250000e-01 : f32
    %8 = vector.broadcast %cst_3 : f32 to vector<1x128xf32>
    %9 = arith.mulf %5, %8 : vector<1x128xf32>
    %10 = arith.mulf %7, %7 : vector<1x128xf32>
    %11 = arith.subf %9, %10 : vector<1x128xf32>
    %cst_4 = arith.constant 9.99999974E-6 : f32
    %12 = vector.broadcast %cst_4 : f32 to vector<1x128xf32>
    %13 = arith.addf %11, %12 : vector<1x128xf32>
    %14 = math.rsqrt %13 : vector<1x128xf32>
    %c0_5 = arith.constant 0 : index
    %c0_6 = arith.constant 0 : index
    %15 = vector.load %arg1[%c0_5, %c0_6] : memref<1x128xf32, #tpu.memory_space<vmem>>, vector<1x128xf32>
    %16 = arith.mulf %14, %15 : vector<1x128xf32>
    %c0_7 = arith.constant 0 : index
    %c0_8 = arith.constant 0 : index
    %17 = vector.load %arg2[%c0_7, %c0_8] : memref<1x128xf32, #tpu.memory_space<vmem>>, vector<1x128xf32>
    %18 = arith.mulf %7, %16 : vector<1x128xf32>
    %19 = arith.subf %17, %18 : vector<1x128xf32>
    %20 = vector.broadcast %16 : vector<1x128xf32> to vector<8x128xf32>
    %21 = arith.mulf %0, %20 : vector<8x128xf32>
    %22 = vector.broadcast %19 : vector<1x128xf32> to vector<8x128xf32>
    %23 = arith.addf %21, %22 : vector<8x128xf32>
    %c0_9 = arith.constant 0 : index
    %c0_10 = arith.constant 0 : index
    %24 = vector.load %arg4[%c0_9, %c0_10] : memref<8x128xf32, #tpu.memory_space<vmem>>, vector<8x128xf32>
    tpu.vector_store %arg4[%c0_9, %c0_10], %23 {strides = array<i32>} : memref<8x128xf32, #tpu.memory_space<vmem>>, vector<8x128xf32>,
    %25 = arith.truncf %23 : vector<8x128xf32> to vector<8x128xbf16>
    %c0_11 = arith.constant 0 : index
    %c0_12 = arith.constant 0 : index
    %26 = vector.load %arg3[%c0_11, %c0_12] : memref<128x128xbf16, #tpu.memory_space<vmem>>, vector<128x128xbf16>
    %cst_13 = arith.constant dense<0.000000e+00> : vector<8x128xf32>
    %27 = tpu.matmul %25, %26, %cst_13 {dimension_numbers = #tpu.dot_dimension_numbers<[1], [1], [0], [0], [0, 0, 1, 0], [], []>} : vector<8x128xbf16>, vector<128x128xbf16>, vector<8x128xf32> -> vector<8x128xf32>
    %c0_14 = arith.constant 0 : index
    %c0_15 = arith.constant 0 : index
    %28 = vector.load %arg5[%c0_14, %c0_15] : memref<8x128xf32, #tpu.memory_space<vmem>>, vector<8x128xf32>
    tpu.vector_store %arg5[%c0_14, %c0_15], %27 {strides = array<i32>} : memref<8x128xf32, #tpu.memory_space<vmem>>, vector<8x128xf32>,
    return
  }
}

</mosaic_0001>

<bundles_post_ra>
// kernel: tpu_custom_call.1
= control target key start
LH: loop header
LB: loop body
LE: loop exit
PB: predicated region body
PF: predicated region fallthrough
CT: control target
= control target key end

     0   :  { %11 = vsyncpa [#allocation3], 0  ;;  %s450_s0 = inlined_call_operand.hbm [shape: f32[8,128], index: 0, kind: input, shape index: {}]   ;;  %s451_s1 = inlined_call_operand.hbm [shape: f32[1,128], index: 1, kind: input, shape index: {}]   ;;  %s452_s2 = inlined_call_operand.vmem [shape: f32[1,128], index: 2, kind: input, shape index: {}]   ;;  %s453_s3 = inlined_call_operand.hbm [shape: bf16[128,128], index: 3, kind: input, shape index: {}]   ;;  %s454_s4 = inlined_call_operand.hbm [shape: f32[8,128], index: 4, kind: output, shape index: {0}]   ;;  %s455_s5 = inlined_call_operand.hbm [shape: f32[8,128], index: 5, kind: output, shape index: {1}]  }
   0x1   :  { %12 = vsyncpa [#allocation6], 0 }
   0x2   :  { %13 = vsyncpa [#allocation4], 0  ;;  %s31_s20 = sshll.u32 %s451_s1, 4  ;;  %s32_s20 = int_to_ptr.hbm [resolvable:$true] %s31_s20 }
   0x3   :  { %14 = vsyncpa [#allocation10], 0  ;;  %s395_s21 = smov [#allocation5]   ;;  %s20_s25 = sshll.u32 %s450_s0, 4  ;;  %s21_s25 = int_to_ptr.hbm [resolvable:$true] %s20_s25 }
   0x4   :  { %s33_s22 = sshll.u32 %s395_s21, 4  ;;  %s396_s26 = smov [#allocation2]   ;;  %s34_s22 = int_to_ptr.vmem [resolvable:$true] %s33_s22 }
   0x5   :  { %36 = dma.hbm_to_vmem [thread:$0]  %s32_s20, 16, %s34_s22, [#allocation6]  }
   0x6   :  { %s22_s27 = sshll.u32 %s396_s26, 4  ;;  %s43_s30 = sshll.u32 %s453_s3, 4  ;;  %s23_s27 = int_to_ptr.vmem [resolvable:$true] %s22_s27  ;;  %s44_s30 = int_to_ptr.hbm [resolvable:$true] %s43_s30 }
   0x7   :  { %25 = dma.hbm_to_vmem [thread:$0]  %s21_s25, 128, %s23_s27, [#allocation3]  }
   0x8   :  { %s397_s1 = smov [#allocation7]   ;;  %s398_s7 = smov 64  }
   0x9   :  { %s45_s6 = sshll.u32 %s397_s1, 4  ;;  %s399_s8 = smov 4   ;;  %s46_s6 = int_to_ptr.vmem [resolvable:$true] %s45_s6 }
   0xa   :  { %51 = dma.hbm_to_vmem [thread:$0]  %s44_s30, 1024, %s46_s6, [#allocation6], %s398_s7, %s398_s7, %s399_s8  }
   0xb   :  { %387 = dma.done.wait [#allocation3], 128  }
   0xc   :  { %388 = vsyncadd [#allocation3], 4294967168 }
   0xd   :  { %389 = dma.done.wait [#allocation6], 1040  }
   0xe   :  { %390 = vsyncadd [#allocation6], 4294966256  ;;  %v257_v0 = vld [vmem:[#allocation7 + $0x38] sm:$0xff]  ;;  %v256_v6 = vld [vmem:[#allocation7 + $0x30] sm:$0xff]  ;;  %s400_s9 = smov [#allocation8]   ;;  %s401_s13 = smov [#allocation9]  }
   0xf   :  { %v64_v1 = vld [vmem:[#allocation2] sm:$0xff]  ;;  %170 = vmatpush.bf16.xpose.msra.mxu0 %v257_v0  ;;  %v255_v15 = vld [vmem:[#allocation7 + $0x28] sm:$0xff]  ;;  %v254_v22 = vld [vmem:[#allocation7 + $0x20] sm:$0xff]  ;;  %s189_s10 = sshll.u32 %s400_s9, 4  ;;  %s200_s14 = sshll.u32 %s401_s13, 4  ;;  %s190_s10 = int_to_ptr.vmem [resolvable:$true] %s189_s10  ;;  %s201_s14 = int_to_ptr.vmem [resolvable:$true] %s200_s14 }
  0x10   :  { %v65_v2 = vrot.slane %v64_v1, 4  ;;  %v71_v3 = vmul.f32 %v64_v1, %v64_v1  ;;  %v253_v25 = vld [vmem:[#allocation7 + $0x18] sm:$0xff]  ;;  %v252_v31 = vld [vmem:[#allocation7 + $0x10] sm:$0xff]  ;;  %v251_v39 = vld [vmem:[#allocation7 + $0x8] sm:$0xff]  ;;  %s202_s17 = sshll.u32 %s455_s5, 4  ;;  %s203_s17 = int_to_ptr.hbm [resolvable:$true] %s202_s17 }
  0x11   :  { %v93_v30 = vld [vmem:[#allocation5] sm:$0x1]  ;;  %v95_v34 = vld [vmem:[%s452_s2] sm:$0x1]  ;;  %v250_v42 = vld [vmem:[#allocation7] sm:$0xff]  ;;  %s191_s2 = sshll.u32 %s454_s4, 4  ;;  %s192_s2 = int_to_ptr.hbm [resolvable:$true] %s191_s2 }
  0x12   :  { %v66_v4 = vadd.f32 %v65_v2, %v64_v1  ;;  %v72_v5 = vrot.slane %v71_v3, 4 }
  0x14   :  { %v67_v7 = vrot.slane %v66_v4, 2  ;;  %v73_v8 = vadd.f32 %v72_v5, %v71_v3 }
  0x16   :  { %v68_v9 = vadd.f32 %v67_v7, %v66_v4  ;;  %v74_v10 = vrot.slane %v73_v8, 2 }
  0x17   :  { %171 = vmatpush.bf16.xpose.msra.mxu0 %v256_v6 }
  0x18   :  { %v69_v11 = vrot.slane %v68_v9, 1  ;;  %v75_v12 = vadd.f32 %v74_v10, %v73_v8 }
  0x1a   :  { %v70_v13 = vadd.f32 %v69_v11, %v68_v9  ;;  %v76_v14 = vrot.slane %v75_v12, 1 }
  0x1c   :  { %v77_v16 = vadd.f32 %v76_v14, %v75_v12  ;;  %v78_v17 = vmul.f32 0.125, %v70_v13 }
  0x1e   :  { %v79_v18 = vmul.f32 0.125, %v77_v16  ;;  %v80_v19 = vmul.f32 %v78_v17, %v78_v17 }
  0x1f   :  { %172 = vmatpush.bf16.xpose.msra.mxu0 %v255_v15 }
  0x20   :  { %v81_v20 = vsub.f32 %v79_v18, %v80_v19 }
  0x22   :  { %v82_v21 = vadd.f32 1e-05, %v81_v20 }
  0x24   :  { %265 = vrsqrt.f32 %v82_v21  ;;  %vm89_vm0 = vweird.f32 %v82_v21 }
  0x27   :  { %173 = vmatpush.bf16.xpose.msra.mxu0 %v254_v22 }
  0x2a   :  { %v266_v23 = vpop.eup %265 }
  0x2b   :  { %v84_v24 = vmul.f32 %v266_v23, %v82_v21  ;;  %vm90_vm1 = vweird.f32 %v266_v23 }
  0x2c   :  { %vm91_vm2 = vmor %vm89_vm0, %vm90_vm1 }
  0x2d   :  { %v85_v26 = vmul.f32 %v266_v23, %v84_v24 }
  0x2f   :  { %v86_v27 = vmul.f32 0.5, %v85_v26  ;;  %174 = vmatpush.bf16.xpose.msra.mxu0 %v253_v25 }
  0x31   :  { %v87_v28 = vsub.f32 1.5, %v86_v27 }
  0x33   :  { %v88_v29 = vmul.f32 %v266_v23, %v87_v28 }
  0x35   :  { %v92_v32 = vsel %vm91_vm2, %v266_v23, %v88_v29 }
  0x36   :  { %v94_v33 = vmul.f32 %v93_v30, %v92_v32 }
  0x37   :  { %175 = vmatpush.bf16.xpose.msra.mxu0 %v252_v31 }
  0x38   :  { %v96_v35 = vmul.f32 %v94_v33, %v78_v17  ;;  %v98_v36 = vperm.slane %v94_v33, 0 }
  0x3a   :  { %v97_v37 = vsub.f32 %v95_v34, %v96_v35  ;;  %v99_v38 = vmul.f32 %v98_v36, %v64_v1 }
  0x3c   :  { %v101_v40 = vperm.slane %v97_v37, 0 }
  0x3e   :  { %v103_v41 = vadd.f32 %v101_v40, %v99_v38 }
  0x3f   :  { %176 = vmatpush.bf16.xpose.msra.mxu0 %v251_v39 }
  0x40   :  { %104 = vst [vmem:[#allocation8] sm:$0xff] %v103_v41  ;;  %v105_v43 = vpack.c.bf16 %v103_v41, %v103_v41 }
  0x41   :  { %194 = dma.vmem_to_hbm [thread:$0]  %s190_s10, 128, %s192_s2, [#allocation4]  }
  0x47   :  { %177 = vmatpush.bf16.xpose.msra.mxu0 %v250_v42 }
  0x4e   :  { %178 = vmatmul.bf16.vlgmr.msra.gmra.mxu0 %v105_v43 }
  0xcb   :  { %v179_v44 = vpop.f32.mrf.mxu0 }
  0xcc   :  { %183 = vst [vmem:[#allocation9] sm:$0xff] %v179_v44 }
  0xcd   :  { %205 = dma.vmem_to_hbm [thread:$0]  %s201_s14, 128, %s203_s17, [#allocation10]  }
  0xd3   :  { %v181_v45 = vpop.f32.mrf.mxu0 }
  0xd4   :  { %391 = dma.done.wait [#allocation4], 128  }
  0xd5   :  { %392 = vsyncadd [#allocation4], 4294967168 }
  0xd6   :  { %393 = dma.done.wait [#allocation10], 128  }
  0xd7   :  { %394 = vsyncadd [#allocation10], 4294967168 }
  0xd8   :  { %214 = vsyncpa [#allocation3], 1 }
  0xd9   :  { %215 = vsyncpa [#allocation6], 1 }
  0xda   :  { %216 = vsyncpa [#allocation4], 1 }
  0xdb   :  { %217 = vsyncpa [#allocation10], 1 }

</bundles_post_ra>
